<compile_context>
chip_gen: v5e
topology: v5e:2x2
jax: 0.10.0
libtpu: 0.0.40
codegen_flags: <defaults>
</compile_context>

<pallas_src>
import math

import jax
import jax.numpy as jnp
from jax.experimental import pallas as pl
from jax.experimental.pallas import tpu as pltpu

TOKENS_PER_TILE = 8  # sublane-aligned token tile; 8 row-DMAs in flight per tile


def embed_gather_kernel(ids_ref, w_hbm, o_ref, buf, sem):
    # ids_ref: SMEM (n_pad,) int32      -- scalar-prefetched token ids
    # w_hbm:   ANY/HBM (d_vocab, d_model) embedding table (vocab-major)
    # o_ref:   VMEM (TM, d_model)       -- pipelined output block for this tile
    # buf:     VMEM (TM, d_model)       -- DMA landing buffer
    # sem:     DMA semaphores (TM,)
    tile = pl.program_id(0)
    tm, _ = o_ref.shape
    d_vocab = w_hbm.shape[0]
    base = tile * tm

    # Issue all row DMAs for this tile, then wait on all of them (overlapped).
    copies = []
    for t in range(tm):
        tok = ids_ref[base + t]
        # Clamp so an out-of-range id can never cause an OOB HBM read
        # (PyTorch would raise; here we clamp deterministically).
        tok = jnp.minimum(jnp.maximum(tok, 0), d_vocab - 1)
        cp = pltpu.make_async_copy(
            w_hbm.at[pl.ds(tok, 1), :],
            buf.at[pl.ds(t, 1), :],
            sem.at[t],
        )
        cp.start()
        copies.append(cp)
    for cp in copies:
        cp.wait()

    # Hand the gathered rows to the (pipelined, lane-dense) output block.
    o_ref[...] = buf[...]


def embed(x, w_vd, *, tokens_per_tile=TOKENS_PER_TILE):
    """Embedding lookup.

    x:    (batch, pos) integer token ids.
    w_vd: (d_vocab, d_model) embedding table, i.e. W_E transposed ONCE at
          parameter-setup time (vocab-major layout so lookups are contiguous
          row DMAs).
    Returns (batch, pos, d_model) with out[b, p, :] = w_vd[x[b, p], :],
    identical to torch.einsum('dbp->bpd', W_E[:, x]).
    """
    d_vocab, d_model = w_vd.shape
    B, P = x.shape
    N = B * P

    tm = tokens_per_tile
    n_pad = ((N + tm - 1) // tm) * tm
    n_tiles = n_pad // tm

    ids = jnp.pad(x.reshape(-1).astype(jnp.int32), (0, n_pad - N))

    out = pl.pallas_call(
        embed_gather_kernel,
        out_shape=jax.ShapeDtypeStruct((n_pad, d_model), w_vd.dtype),
        grid_spec=pltpu.PrefetchScalarGridSpec(
            num_scalar_prefetch=1,          # ids -> SMEM
            grid=(n_tiles,),
            in_specs=[
                pl.BlockSpec(memory_space=pl.ANY),   # table stays in HBM; manual DMA
            ],
            out_specs=pl.BlockSpec((tm, d_model), lambda i, ids: (i, 0)),
            scratch_shapes=[
                pltpu.VMEM((tm, d_model), w_vd.dtype),
                pltpu.SemaphoreType.DMA((tm,)),
            ],
        ),
        compiler_params=pltpu.CompilerParams(
            dimension_semantics=("parallel",),   # v7x: split token tiles over 2 TCs
        ),
    )(ids, w_vd)

    return out[:N].reshape(B, P, d_model)


if __name__ == "__main__":
    d_vocab = 512
    d_model = 128   # lane-dense output (multiple of 128)
    batch = 2
    pos = 13        # N = 26 -> padded to 32 (exercises the ragged tail path)

    key = jax.random.PRNGKey(0)
    k_w, k_x = jax.random.split(key)

    # Parameter init matching torch.randn(d_model, d_vocab) / sqrt(d_model).
    W_E = jax.random.normal(k_w, (d_model, d_vocab), dtype=jnp.float32) / math.sqrt(
        d_model
    )
    # ONE-TIME layout change at parameter setup: store the table vocab-major so
    # every forward call is a pure row gather (no per-call transpose).
    w_vd = jnp.transpose(W_E)  # (d_vocab, d_model)

    x = jax.random.randint(k_x, (batch, pos), 0, d_vocab, dtype=jnp.int32)

    out = embed(x, w_vd)
    out = jax.block_until_ready(out)

    # Reference: out[b, p, d] = W_E[d, x[b, p]]
    ref = jnp.take(w_vd, x.reshape(-1), axis=0).reshape(batch, pos, d_model)

    assert out.shape == (batch, pos, d_model), out.shape
    assert jnp.allclose(out, ref, atol=1e-6), float(jnp.max(jnp.abs(out - ref)))

    print("KERNEL_OK")
</pallas_src>

<mosaic_0001>
module attributes {stable_mosaic.version = 11 : i64} {
  func.func @embed_gather_kernel(%arg0: i32, %arg1: memref<32xi32, #tpu.memory_space<smem>>, %arg2: memref<512x128xf32, #tpu.memory_space<any>>, %arg3: memref<8x128xf32, #tpu.memory_space<vmem>>, %arg4: memref<8x128xf32, #tpu.memory_space<vmem>>, %arg5: memref<8x!tpu.dma_semaphore, #tpu.memory_space<semaphore_mem>>) attributes {dimension_semantics = [#tpu.dimension_semantics<parallel>], iteration_bounds = array<i64: 4>, scalar_prefetch = 1 : i64, scratch_operands = 2 : i64, tpu.core_type = #tpu.core_type<tc>, window_params = [{}, {transform_indices = @transform_1, window_bounds = array<i64: 8, 128>}]} {
    %c8_i32 = arith.constant 8 : i32
    %0 = arith.muli %arg0, %c8_i32 : i32
    %c0_i32 = arith.constant 0 : i32
    %1 = arith.addi %0, %c0_i32 : i32
    %2 = arith.index_cast %1 : i32 to index
    %3 = memref.load %arg1[%2] : memref<32xi32, #tpu.memory_space<smem>>
    %c0_i32_0 = arith.constant 0 : i32
    %4 = arith.maxsi %3, %c0_i32_0 : i32
    %c511_i32 = arith.constant 511 : i32
    %5 = arith.minsi %4, %c511_i32 : i32
    %c0_i32_1 = arith.constant 0 : i32
    %c0_i32_2 = arith.constant 0 : i32
    %6 = tpu.memref_slice %arg2[%5, %c0_i32_2] : memref<512x128xf32, #tpu.memory_space<any>> -> memref<1x128xf32, #tpu.memory_space<any>>
    %c0_i32_3 = arith.constant 0 : i32
    %c0_i32_4 = arith.constant 0 : i32
    %7 = tpu.memref_slice %arg4[%c0_i32_3, %c0_i32_4] : memref<8x128xf32, #tpu.memory_space<vmem>> -> memref<1x128xf32, #tpu.memory_space<vmem>>
    %8 = tpu.memref_slice %arg5[%c0_i32_1] : memref<8x!tpu.dma_semaphore, #tpu.memory_space<semaphore_mem>> -> memref<1x!tpu.dma_semaphore, #tpu.memory_space<semaphore_mem>>
    %9 = tpu.memref_squeeze %8 : memref<1x!tpu.dma_semaphore, #tpu.memory_space<semaphore_mem>> -> memref<!tpu.dma_semaphore, #tpu.memory_space<semaphore_mem>>
    tpu.enqueue_dma source(%6 : memref<1x128xf32, #tpu.memory_space<any>>) target(%7 : memref<1x128xf32, #tpu.memory_space<vmem>>) target_semaphore(%9 : memref<!tpu.dma_semaphore, #tpu.memory_space<semaphore_mem>>)
    %c1_i32 = arith.constant 1 : i32
    %10 = arith.addi %0, %c1_i32 : i32
    %11 = arith.index_cast %10 : i32 to index
    %12 = memref.load %arg1[%11] : memref<32xi32, #tpu.memory_space<smem>>
    %c0_i32_5 = arith.constant 0 : i32
    %13 = arith.maxsi %12, %c0_i32_5 : i32
    %c511_i32_6 = arith.constant 511 : i32
    %14 = arith.minsi %13, %c511_i32_6 : i32
    %c1_i32_7 = arith.constant 1 : i32
    %c0_i32_8 = arith.constant 0 : i32
    %15 = tpu.memref_slice %arg2[%14, %c0_i32_8] : memref<512x128xf32, #tpu.memory_space<any>> -> memref<1x128xf32, #tpu.memory_space<any>>
    %c1_i32_9 = arith.constant 1 : i32
    %c0_i32_10 = arith.constant 0 : i32
    %16 = tpu.memref_slice %arg4[%c1_i32_9, %c0_i32_10] : memref<8x128xf32, #tpu.memory_space<vmem>> -> memref<1x128xf32, #tpu.memory_space<vmem>>
    %17 = tpu.memref_slice %arg5[%c1_i32_7] : memref<8x!tpu.dma_semaphore, #tpu.memory_space<semaphore_mem>> -> memref<1x!tpu.dma_semaphore, #tpu.memory_space<semaphore_mem>>
    %18 = tpu.memref_squeeze %17 : memref<1x!tpu.dma_semaphore, #tpu.memory_space<semaphore_mem>> -> memref<!tpu.dma_semaphore, #tpu.memory_space<semaphore_mem>>
    tpu.enqueue_dma source(%15 : memref<1x128xf32, #tpu.memory_space<any>>) target(%16 : memref<1x128xf32, #tpu.memory_space<vmem>>) target_semaphore(%18 : memref<!tpu.dma_semaphore, #tpu.memory_space<semaphore_mem>>)
    %c2_i32 = arith.constant 2 : i32
    %19 = arith.addi %0, %c2_i32 : i32
    %20 = arith.index_cast %19 : i32 to index
    %21 = memref.load %arg1[%20] : memref<32xi32, #tpu.memory_space<smem>>
    %c0_i32_11 = arith.constant 0 : i32
    %22 = arith.maxsi %21, %c0_i32_11 : i32
    %c511_i32_12 = arith.constant 511 : i32
    %23 = arith.minsi %22, %c511_i32_12 : i32
    %c2_i32_13 = arith.constant 2 : i32
    %c0_i32_14 = arith.constant 0 : i32
    %24 = tpu.memref_slice %arg2[%23, %c0_i32_14] : memref<512x128xf32, #tpu.memory_space<any>> -> memref<1x128xf32, #tpu.memory_space<any>>
    %c2_i32_15 = arith.constant 2 : i32
    %c0_i32_16 = arith.constant 0 : i32
    %25 = tpu.memref_slice %arg4[%c2_i32_15, %c0_i32_16] : memref<8x128xf32, #tpu.memory_space<vmem>> -> memref<1x128xf32, #tpu.memory_space<vmem>>
    %26 = tpu.memref_slice %arg5[%c2_i32_13] : memref<8x!tpu.dma_semaphore, #tpu.memory_space<semaphore_mem>> -> memref<1x!tpu.dma_semaphore, #tpu.memory_space<semaphore_mem>>
    %27 = tpu.memref_squeeze %26 : memref<1x!tpu.dma_semaphore, #tpu.memory_space<semaphore_mem>> -> memref<!tpu.dma_semaphore, #tpu.memory_space<semaphore_mem>>
    tpu.enqueue_dma source(%24 : memref<1x128xf32, #tpu.memory_space<any>>) target(%25 : memref<1x128xf32, #tpu.memory_space<vmem>>) target_semaphore(%27 : memref<!tpu.dma_semaphore, #tpu.memory_space<semaphore_mem>>)
    %c3_i32 = arith.constant 3 : i32
    %28 = arith.addi %0, %c3_i32 : i32
    %29 = arith.index_cast %28 : i32 to index
    %30 = memref.load %arg1[%29] : memref<32xi32, #tpu.memory_space<smem>>
    %c0_i32_17 = arith.constant 0 : i32
    %31 = arith.maxsi %30, %c0_i32_17 : i32
    %c511_i32_18 = arith.constant 511 : i32
    %32 = arith.minsi %31, %c511_i32_18 : i32
    %c3_i32_19 = arith.constant 3 : i32
    %c0_i32_20 = arith.constant 0 : i32
    %33 = tpu.memref_slice %arg2[%32, %c0_i32_20] : memref<512x128xf32, #tpu.memory_space<any>> -> memref<1x128xf32, #tpu.memory_space<any>>
    %c3_i32_21 = arith.constant 3 : i32
    %c0_i32_22 = arith.constant 0 : i32
    %34 = tpu.memref_slice %arg4[%c3_i32_21, %c0_i32_22] : memref<8x128xf32, #tpu.memory_space<vmem>> -> memref<1x128xf32, #tpu.memory_space<vmem>>
    %35 = tpu.memref_slice %arg5[%c3_i32_19] : memref<8x!tpu.dma_semaphore, #tpu.memory_space<semaphore_mem>> -> memref<1x!tpu.dma_semaphore, #tpu.memory_space<semaphore_mem>>
    %36 = tpu.memref_squeeze %35 : memref<1x!tpu.dma_semaphore, #tpu.memory_space<semaphore_mem>> -> memref<!tpu.dma_semaphore, #tpu.memory_space<semaphore_mem>>
    tpu.enqueue_dma source(%33 : memref<1x128xf32, #tpu.memory_space<any>>) target(%34 : memref<1x128xf32, #tpu.memory_space<vmem>>) target_semaphore(%36 : memref<!tpu.dma_semaphore, #tpu.memory_space<semaphore_mem>>)
    %c4_i32 = arith.constant 4 : i32
    %37 = arith.addi %0, %c4_i32 : i32
    %38 = arith.index_cast %37 : i32 to index
    %39 = memref.load %arg1[%38] : memref<32xi32, #tpu.memory_space<smem>>
    %c0_i32_23 = arith.constant 0 : i32
    %40 = arith.maxsi %39, %c0_i32_23 : i32
    %c511_i32_24 = arith.constant 511 : i32
    %41 = arith.minsi %40, %c511_i32_24 : i32
    %c4_i32_25 = arith.constant 4 : i32
    %c0_i32_26 = arith.constant 0 : i32
    %42 = tpu.memref_slice %arg2[%41, %c0_i32_26] : memref<512x128xf32, #tpu.memory_space<any>> -> memref<1x128xf32, #tpu.memory_space<any>>
    %c4_i32_27 = arith.constant 4 : i32
    %c0_i32_28 = arith.constant 0 : i32
    %43 = tpu.memref_slice %arg4[%c4_i32_27, %c0_i32_28] : memref<8x128xf32, #tpu.memory_space<vmem>> -> memref<1x128xf32, #tpu.memory_space<vmem>>
    %44 = tpu.memref_slice %arg5[%c4_i32_25] : memref<8x!tpu.dma_semaphore, #tpu.memory_space<semaphore_mem>> -> memref<1x!tpu.dma_semaphore, #tpu.memory_space<semaphore_mem>>
    %45 = tpu.memref_squeeze %44 : memref<1x!tpu.dma_semaphore, #tpu.memory_space<semaphore_mem>> -> memref<!tpu.dma_semaphore, #tpu.memory_space<semaphore_mem>>
    tpu.enqueue_dma source(%42 : memref<1x128xf32, #tpu.memory_space<any>>) target(%43 : memref<1x128xf32, #tpu.memory_space<vmem>>) target_semaphore(%45 : memref<!tpu.dma_semaphore, #tpu.memory_space<semaphore_mem>>)
    %c5_i32 = arith.constant 5 : i32
    %46 = arith.addi %0, %c5_i32 : i32
    %47 = arith.index_cast %46 : i32 to index
    %48 = memref.load %arg1[%47] : memref<32xi32, #tpu.memory_space<smem>>
    %c0_i32_29 = arith.constant 0 : i32
    %49 = arith.maxsi %48, %c0_i32_29 : i32
    %c511_i32_30 = arith.constant 511 : i32
    %50 = arith.minsi %49, %c511_i32_30 : i32
    %c5_i32_31 = arith.constant 5 : i32
    %c0_i32_32 = arith.constant 0 : i32
    %51 = tpu.memref_slice %arg2[%50, %c0_i32_32] : memref<512x128xf32, #tpu.memory_space<any>> -> memref<1x128xf32, #tpu.memory_space<any>>
    %c5_i32_33 = arith.constant 5 : i32
    %c0_i32_34 = arith.constant 0 : i32
    %52 = tpu.memref_slice %arg4[%c5_i32_33, %c0_i32_34] : memref<8x128xf32, #tpu.memory_space<vmem>> -> memref<1x128xf32, #tpu.memory_space<vmem>>
    %53 = tpu.memref_slice %arg5[%c5_i32_31] : memref<8x!tpu.dma_semaphore, #tpu.memory_space<semaphore_mem>> -> memref<1x!tpu.dma_semaphore, #tpu.memory_space<semaphore_mem>>
    %54 = tpu.memref_squeeze %53 : memref<1x!tpu.dma_semaphore, #tpu.memory_space<semaphore_mem>> -> memref<!tpu.dma_semaphore, #tpu.memory_space<semaphore_mem>>
    tpu.enqueue_dma source(%51 : memref<1x128xf32, #tpu.memory_space<any>>) target(%52 : memref<1x128xf32, #tpu.memory_space<vmem>>) target_semaphore(%54 : memref<!tpu.dma_semaphore, #tpu.memory_space<semaphore_mem>>)
    %c6_i32 = arith.constant 6 : i32
    %55 = arith.addi %0, %c6_i32 : i32
    %56 = arith.index_cast %55 : i32 to index
    %57 = memref.load %arg1[%56] : memref<32xi32, #tpu.memory_space<smem>>
    %c0_i32_35 = arith.constant 0 : i32
    %58 = arith.maxsi %57, %c0_i32_35 : i32
    %c511_i32_36 = arith.constant 511 : i32
    %59 = arith.minsi %58, %c511_i32_36 : i32
    %c6_i32_37 = arith.constant 6 : i32
    %c0_i32_38 = arith.constant 0 : i32
    %60 = tpu.memref_slice %arg2[%59, %c0_i32_38] : memref<512x128xf32, #tpu.memory_space<any>> -> memref<1x128xf32, #tpu.memory_space<any>>
    %c6_i32_39 = arith.constant 6 : i32
    %c0_i32_40 = arith.constant 0 : i32
    %61 = tpu.memref_slice %arg4[%c6_i32_39, %c0_i32_40] : memref<8x128xf32, #tpu.memory_space<vmem>> -> memref<1x128xf32, #tpu.memory_space<vmem>>
    %62 = tpu.memref_slice %arg5[%c6_i32_37] : memref<8x!tpu.dma_semaphore, #tpu.memory_space<semaphore_mem>> -> memref<1x!tpu.dma_semaphore, #tpu.memory_space<semaphore_mem>>
    %63 = tpu.memref_squeeze %62 : memref<1x!tpu.dma_semaphore, #tpu.memory_space<semaphore_mem>> -> memref<!tpu.dma_semaphore, #tpu.memory_space<semaphore_mem>>
    tpu.enqueue_dma source(%60 : memref<1x128xf32, #tpu.memory_space<any>>) target(%61 : memref<1x128xf32, #tpu.memory_space<vmem>>) target_semaphore(%63 : memref<!tpu.dma_semaphore, #tpu.memory_space<semaphore_mem>>)
    %c7_i32 = arith.constant 7 : i32
    %64 = arith.addi %0, %c7_i32 : i32
    %65 = arith.index_cast %64 : i32 to index
    %66 = memref.load %arg1[%65] : memref<32xi32, #tpu.memory_space<smem>>
    %c0_i32_41 = arith.constant 0 : i32
    %67 = arith.maxsi %66, %c0_i32_41 : i32
    %c511_i32_42 = arith.constant 511 : i32
    %68 = arith.minsi %67, %c511_i32_42 : i32
    %c7_i32_43 = arith.constant 7 : i32
    %c0_i32_44 = arith.constant 0 : i32
    %69 = tpu.memref_slice %arg2[%68, %c0_i32_44] : memref<512x128xf32, #tpu.memory_space<any>> -> memref<1x128xf32, #tpu.memory_space<any>>
    %c7_i32_45 = arith.constant 7 : i32
    %c0_i32_46 = arith.constant 0 : i32
    %70 = tpu.memref_slice %arg4[%c7_i32_45, %c0_i32_46] : memref<8x128xf32, #tpu.memory_space<vmem>> -> memref<1x128xf32, #tpu.memory_space<vmem>>
    %71 = tpu.memref_slice %arg5[%c7_i32_43] : memref<8x!tpu.dma_semaphore, #tpu.memory_space<semaphore_mem>> -> memref<1x!tpu.dma_semaphore, #tpu.memory_space<semaphore_mem>>
    %72 = tpu.memref_squeeze %71 : memref<1x!tpu.dma_semaphore, #tpu.memory_space<semaphore_mem>> -> memref<!tpu.dma_semaphore, #tpu.memory_space<semaphore_mem>>
    tpu.enqueue_dma source(%69 : memref<1x128xf32, #tpu.memory_space<any>>) target(%70 : memref<1x128xf32, #tpu.memory_space<vmem>>) target_semaphore(%72 : memref<!tpu.dma_semaphore, #tpu.memory_space<semaphore_mem>>)
    %c0_i32_47 = arith.constant 0 : i32
    %c0_i32_48 = arith.constant 0 : i32
    %73 = tpu.memref_slice %arg2[%5, %c0_i32_48] : memref<512x128xf32, #tpu.memory_space<any>> -> memref<1x128xf32, #tpu.memory_space<any>>
    %c0_i32_49 = arith.constant 0 : i32
    %c0_i32_50 = arith.constant 0 : i32
    %74 = tpu.memref_slice %arg4[%c0_i32_49, %c0_i32_50] : memref<8x128xf32, #tpu.memory_space<vmem>> -> memref<1x128xf32, #tpu.memory_space<vmem>>
    %75 = tpu.memref_slice %arg5[%c0_i32_47] : memref<8x!tpu.dma_semaphore, #tpu.memory_space<semaphore_mem>> -> memref<1x!tpu.dma_semaphore, #tpu.memory_space<semaphore_mem>>
    %76 = tpu.memref_squeeze %75 : memref<1x!tpu.dma_semaphore, #tpu.memory_space<semaphore_mem>> -> memref<!tpu.dma_semaphore, #tpu.memory_space<semaphore_mem>>
    tpu.wait_dma2 semaphore(%76 : memref<!tpu.dma_semaphore, #tpu.memory_space<semaphore_mem>>) src(%73 : memref<1x128xf32, #tpu.memory_space<any>>) dst(%74 : memref<1x128xf32, #tpu.memory_space<vmem>>)
    %c1_i32_51 = arith.constant 1 : i32
    %c0_i32_52 = arith.constant 0 : i32
    %77 = tpu.memref_slice %arg2[%14, %c0_i32_52] : memref<512x128xf32, #tpu.memory_space<any>> -> memref<1x128xf32, #tpu.memory_space<any>>
    %c1_i32_53 = arith.constant 1 : i32
    %c0_i32_54 = arith.constant 0 : i32
    %78 = tpu.memref_slice %arg4[%c1_i32_53, %c0_i32_54] : memref<8x128xf32, #tpu.memory_space<vmem>> -> memref<1x128xf32, #tpu.memory_space<vmem>>
    %79 = tpu.memref_slice %arg5[%c1_i32_51] : memref<8x!tpu.dma_semaphore, #tpu.memory_space<semaphore_mem>> -> memref<1x!tpu.dma_semaphore, #tpu.memory_space<semaphore_mem>>
    %80 = tpu.memref_squeeze %79 : memref<1x!tpu.dma_semaphore, #tpu.memory_space<semaphore_mem>> -> memref<!tpu.dma_semaphore, #tpu.memory_space<semaphore_mem>>
    tpu.wait_dma2 semaphore(%80 : memref<!tpu.dma_semaphore, #tpu.memory_space<semaphore_mem>>) src(%77 : memref<1x128xf32, #tpu.memory_space<any>>) dst(%78 : memref<1x128xf32, #tpu.memory_space<vmem>>)
    %c2_i32_55 = arith.constant 2 : i32
    %c0_i32_56 = arith.constant 0 : i32
    %81 = tpu.memref_slice %arg2[%23, %c0_i32_56] : memref<512x128xf32, #tpu.memory_space<any>> -> memref<1x128xf32, #tpu.memory_space<any>>
    %c2_i32_57 = arith.constant 2 : i32
    %c0_i32_58 = arith.constant 0 : i32
    %82 = tpu.memref_slice %arg4[%c2_i32_57, %c0_i32_58] : memref<8x128xf32, #tpu.memory_space<vmem>> -> memref<1x128xf32, #tpu.memory_space<vmem>>
    %83 = tpu.memref_slice %arg5[%c2_i32_55] : memref<8x!tpu.dma_semaphore, #tpu.memory_space<semaphore_mem>> -> memref<1x!tpu.dma_semaphore, #tpu.memory_space<semaphore_mem>>
    %84 = tpu.memref_squeeze %83 : memref<1x!tpu.dma_semaphore, #tpu.memory_space<semaphore_mem>> -> memref<!tpu.dma_semaphore, #tpu.memory_space<semaphore_mem>>
    tpu.wait_dma2 semaphore(%84 : memref<!tpu.dma_semaphore, #tpu.memory_space<semaphore_mem>>) src(%81 : memref<1x128xf32, #tpu.memory_space<any>>) dst(%82 : memref<1x128xf32, #tpu.memory_space<vmem>>)
    %c3_i32_59 = arith.constant 3 : i32
    %c0_i32_60 = arith.constant 0 : i32
    %85 = tpu.memref_slice %arg2[%32, %c0_i32_60] : memref<512x128xf32, #tpu.memory_space<any>> -> memref<1x128xf32, #tpu.memory_space<any>>
    %c3_i32_61 = arith.constant 3 : i32
    %c0_i32_62 = arith.constant 0 : i32
    %86 = tpu.memref_slice %arg4[%c3_i32_61, %c0_i32_62] : memref<8x128xf32, #tpu.memory_space<vmem>> -> memref<1x128xf32, #tpu.memory_space<vmem>>
    %87 = tpu.memref_slice %arg5[%c3_i32_59] : memref<8x!tpu.dma_semaphore, #tpu.memory_space<semaphore_mem>> -> memref<1x!tpu.dma_semaphore, #tpu.memory_space<semaphore_mem>>
    %88 = tpu.memref_squeeze %87 : memref<1x!tpu.dma_semaphore, #tpu.memory_space<semaphore_mem>> -> memref<!tpu.dma_semaphore, #tpu.memory_space<semaphore_mem>>
    tpu.wait_dma2 semaphore(%88 : memref<!tpu.dma_semaphore, #tpu.memory_space<semaphore_mem>>) src(%85 : memref<1x128xf32, #tpu.memory_space<any>>) dst(%86 : memref<1x128xf32, #tpu.memory_space<vmem>>)
    %c4_i32_63 = arith.constant 4 : i32
    %c0_i32_64 = arith.constant 0 : i32
    %89 = tpu.memref_slice %arg2[%41, %c0_i32_64] : memref<512x128xf32, #tpu.memory_space<any>> -> memref<1x128xf32, #tpu.memory_space<any>>
    %c4_i32_65 = arith.constant 4 : i32
    %c0_i32_66 = arith.constant 0 : i32
    %90 = tpu.memref_slice %arg4[%c4_i32_65, %c0_i32_66] : memref<8x128xf32, #tpu.memory_space<vmem>> -> memref<1x128xf32, #tpu.memory_space<vmem>>
    %91 = tpu.memref_slice %arg5[%c4_i32_63] : memref<8x!tpu.dma_semaphore, #tpu.memory_space<semaphore_mem>> -> memref<1x!tpu.dma_semaphore, #tpu.memory_space<semaphore_mem>>
    %92 = tpu.memref_squeeze %91 : memref<1x!tpu.dma_semaphore, #tpu.memory_space<semaphore_mem>> -> memref<!tpu.dma_semaphore, #tpu.memory_space<semaphore_mem>>
    tpu.wait_dma2 semaphore(%92 : memref<!tpu.dma_semaphore, #tpu.memory_space<semaphore_mem>>) src(%89 : memref<1x128xf32, #tpu.memory_space<any>>) dst(%90 : memref<1x128xf32, #tpu.memory_space<vmem>>)
    %c5_i32_67 = arith.constant 5 : i32
    %c0_i32_68 = arith.constant 0 : i32
    %93 = tpu.memref_slice %arg2[%50, %c0_i32_68] : memref<512x128xf32, #tpu.memory_space<any>> -> memref<1x128xf32, #tpu.memory_space<any>>
    %c5_i32_69 = arith.constant 5 : i32
    %c0_i32_70 = arith.constant 0 : i32
    %94 = tpu.memref_slice %arg4[%c5_i32_69, %c0_i32_70] : memref<8x128xf32, #tpu.memory_space<vmem>> -> memref<1x128xf32, #tpu.memory_space<vmem>>
    %95 = tpu.memref_slice %arg5[%c5_i32_67] : memref<8x!tpu.dma_semaphore, #tpu.memory_space<semaphore_mem>> -> memref<1x!tpu.dma_semaphore, #tpu.memory_space<semaphore_mem>>
    %96 = tpu.memref_squeeze %95 : memref<1x!tpu.dma_semaphore, #tpu.memory_space<semaphore_mem>> -> memref<!tpu.dma_semaphore, #tpu.memory_space<semaphore_mem>>
    tpu.wait_dma2 semaphore(%96 : memref<!tpu.dma_semaphore, #tpu.memory_space<semaphore_mem>>) src(%93 : memref<1x128xf32, #tpu.memory_space<any>>) dst(%94 : memref<1x128xf32, #tpu.memory_space<vmem>>)
    %c6_i32_71 = arith.constant 6 : i32
    %c0_i32_72 = arith.constant 0 : i32
    %97 = tpu.memref_slice %arg2[%59, %c0_i32_72] : memref<512x128xf32, #tpu.memory_space<any>> -> memref<1x128xf32, #tpu.memory_space<any>>
    %c6_i32_73 = arith.constant 6 : i32
    %c0_i32_74 = arith.constant 0 : i32
    %98 = tpu.memref_slice %arg4[%c6_i32_73, %c0_i32_74] : memref<8x128xf32, #tpu.memory_space<vmem>> -> memref<1x128xf32, #tpu.memory_space<vmem>>
    %99 = tpu.memref_slice %arg5[%c6_i32_71] : memref<8x!tpu.dma_semaphore, #tpu.memory_space<semaphore_mem>> -> memref<1x!tpu.dma_semaphore, #tpu.memory_space<semaphore_mem>>
    %100 = tpu.memref_squeeze %99 : memref<1x!tpu.dma_semaphore, #tpu.memory_space<semaphore_mem>> -> memref<!tpu.dma_semaphore, #tpu.memory_space<semaphore_mem>>
    tpu.wait_dma2 semaphore(%100 : memref<!tpu.dma_semaphore, #tpu.memory_space<semaphore_mem>>) src(%97 : memref<1x128xf32, #tpu.memory_space<any>>) dst(%98 : memref<1x128xf32, #tpu.memory_space<vmem>>)
    %c7_i32_75 = arith.constant 7 : i32
    %c0_i32_76 = arith.constant 0 : i32
    %101 = tpu.memref_slice %arg2[%68, %c0_i32_76] : memref<512x128xf32, #tpu.memory_space<any>> -> memref<1x128xf32, #tpu.memory_space<any>>
    %c7_i32_77 = arith.constant 7 : i32
    %c0_i32_78 = arith.constant 0 : i32
    %102 = tpu.memref_slice %arg4[%c7_i32_77, %c0_i32_78] : memref<8x128xf32, #tpu.memory_space<vmem>> -> memref<1x128xf32, #tpu.memory_space<vmem>>
    %103 = tpu.memref_slice %arg5[%c7_i32_75] : memref<8x!tpu.dma_semaphore, #tpu.memory_space<semaphore_mem>> -> memref<1x!tpu.dma_semaphore, #tpu.memory_space<semaphore_mem>>
    %104 = tpu.memref_squeeze %103 : memref<1x!tpu.dma_semaphore, #tpu.memory_space<semaphore_mem>> -> memref<!tpu.dma_semaphore, #tpu.memory_space<semaphore_mem>>
    tpu.wait_dma2 semaphore(%104 : memref<!tpu.dma_semaphore, #tpu.memory_space<semaphore_mem>>) src(%101 : memref<1x128xf32, #tpu.memory_space<any>>) dst(%102 : memref<1x128xf32, #tpu.memory_space<vmem>>)
    %c0 = arith.constant 0 : index
    %c0_79 = arith.constant 0 : index
    %105 = vector.load %arg4[%c0, %c0_79] : memref<8x128xf32, #tpu.memory_space<vmem>>, vector<8x128xf32>
    %c0_80 = arith.constant 0 : index
    %c0_81 = arith.constant 0 : index
    %106 = vector.load %arg3[%c0_80, %c0_81] : memref<8x128xf32, #tpu.memory_space<vmem>>, vector<8x128xf32>
    tpu.vector_store %arg3[%c0_80, %c0_81], %105 {strides = array<i32>} : memref<8x128xf32, #tpu.memory_space<vmem>>, vector<8x128xf32>,
    return
  }
  func.func @transform_1(%arg0: i32, %arg1: memref<32xi32, #tpu.memory_space<smem>>) -> (i32, i32) {
    %c0_i32 = arith.constant 0 : i32
    %c0_i32_0 = arith.constant 0 : i32
    return %arg0, %c0_i32 : i32, i32
  }
}

</mosaic_0001>

<bundles_post_ra>
// kernel: tpu_custom_call.1
= control target key start
LH: loop header
LB: loop body
LE: loop exit
PB: predicated region body
PF: predicated region fallthrough
CT: control target
= control target key end

     0   :  { %s762_s12 = smov [#allocation5]   ;;  %s989_s0 = inlined_call_operand.hbm [shape: s32[32], index: 0, kind: input, shape index: {}]   ;;  %s990_s1 = inlined_call_operand.hbm [shape: f32[512,128], index: 1, kind: input, shape index: {}]   ;;  %s991_s2 = inlined_call_operand.hbm [shape: f32[32,128], index: 2, kind: output, shape index: {}]  }
   0x1   :  { %s8_s11 = sshll.u32 %s989_s0, 4  ;;  %s9_s11 = int_to_ptr.hbm [resolvable:$true] %s8_s11 }
   0x2   :  { %11 = dma.hbm_to_smem %s9_s11, 16, %s762_s12, [#allocation4] }
   0x3   :  { %728 = dma.done.wait [#allocation4], 16 }
   0x4   :  { %729 = vsyncadd [#allocation4], 4294967280 }
   0x5   :  { %14 = sfence }
   0x6   :  { %15 = vsyncpa [#allocation7], 0 }
   0x7   :  { %17 = vsyncpa [#allocation7 + $0x1], 0  ;;  %s789_s13 = smov 0   ;;  %s791_s14 = smov 0  }
   0x8   :  { %s793_s15 = smov 0  }
   0x9 LB: > { %s371_s0 = sadd.s32 4294967295, %s760_s15   ;;  %s806_s16 = sadd.s32 1, %s760_s15   ;;  %s760_s15 = sphi %s793_s15, %s996_s15   ;;  %s756_s14 = sphi %s791_s14, %s995_s14   ;;  %s752_s13 = sphi %s789_s13, %s994_s13  }
   0xa   : > { %s26_s17 = ssub.s32 %s760_s15, %s806_s16  ;;  %s29_s18 = sadd.s32 1, %s756_s14 }
   0xb   : > { %p27_p0 = scmp.eq.s32.totalorder %s26_s17, 0  ;;  %p372_p1 = scmp.ne.s32.totalorder %s26_s17, 0 }
   0xc   : > { %p33_p2 = scmp.eq.s32.totalorder %s760_s15, 3  ;;  %p38_p3 = scmp.ne.s32.totalorder %s756_s14, %s752_s13 }
   0xd   : > { %s815_s19 = scalar_select %p27_p0, %s756_s14, %s29_s18  }
   0xe   : > { %p817_p4 = por %p372_p1, %p33_p2  ;;  %p39_p5 = scmp.eq.s32.totalorder %s371_s0, 3 }
   0xf   : > { %p373_p7 = scmp.ge.s32.totalorder %s760_s15, 4 }
  0x10   : > { %p821_p6 = por %p39_p5, %p38_p3  ;;  %s53_s22 = sand.u32 (!%p373_p7), 1, %s756_s14  }
  0x11   : > { %48 = sbr.rel (%p373_p7) target bundleno = 178 (0xb2), region = 12  ;;  %s828_s23 = sshll.u32 (!%p373_p7), %s760_s15, 3 }
  0x12   : > { %s832_s24 = sshll.u32 (!%p373_p7), %s53_s22, 3  ;;  %s57_s25 = sld [smem:[#allocation5 + %s828_s23]] (!%p373_p7) }
  0x13   : > { %s76_s26 = sadd.s32 (!%p373_p7), 1, %s828_s23  ;;  %s763_s27 = smov (!%p373_p7), [#allocation2]  }
  0x14   : > { %s836_s28 = sshll.u32 (!%p373_p7), %s763_s27, 4  ;;  %s838_s29 = sld [smem:[#allocation5 + %s76_s26]] (!%p373_p7)  ;;  %s73_s28 = int_to_ptr.vmem [resolvable:$true] %s836_s28 }
  0x15   : > { %s98_s30 = sadd.s32 (!%p373_p7), 2, %s828_s23  ;;  %s764_s3 = smov (!%p373_p7), [#allocation2 + $0x1]  }
  0x16   : > { %s841_s4 = sshll.u32 %s764_s3, 4  ;;  %s843_s5 = sld [smem:[#allocation5 + %s98_s30]]  ;;  %s95_s4 = int_to_ptr.vmem [resolvable:$true] %s841_s4 }
  0x17   : > { %s858_s18 = scalar_lea.hbm %s990_s1, 512 }
  0x18   : > { %p58_p8 = scmp.gt.s32.totalorder %s57_s25, 0  ;;  %p376_p9 = scmp.lt.s32.totalorder %s57_s25, 511 }
  0x1a   : > { %s998_s25 = smov (!%p58_p8, %s57_s25), 0  ;;  %p78_p10 = scmp.gt.s32.totalorder %s838_s29, 0 }
  0x1b   : > { %s1000_s25 = smov (!%p376_p9, %s998_s25), 511  ;;  %p381_p11 = scmp.lt.s32.totalorder %s838_s29, 511 }
  0x1c   : > { %s79_s6 = scalar_select %p78_p10, %s838_s29, 0 }
  0x1d   : > { %s62_s9 = scalar_lea.hbm %s990_s1, %s1000_s25  ;;  %p100_p12 = scmp.gt.s32.totalorder %s843_s5, 0 }
  0x1e   : > { %s70_s10 = sshll.u32 %s62_s9, 4  ;;  %p386_p13 = scmp.lt.s32.totalorder %s843_s5, 511  ;;  %s71_s10 = int_to_ptr.hbm [resolvable:$true] %s70_s10 }
  0x1f   : > { %s496_s11 = sshra.s32 %s71_s10, 4  ;;  %s497_s11 = int_to_ptr.hbm [resolvable:$true] %s496_s11 }
  0x20   : > { %s498_s12 = scalar_lea.hbm %s497_s11, 1  ;;  %p501_p1 = scmp.lt.s32.totalorder %s497_s11, %s990_s1 }
  0x21   : > { %p499_p0 = scmp.ne.s32.totalorder %s497_s11, %s498_s12  ;;  %p502_p2 = scmp.lt.s32.totalorder %s858_s18, %s498_s12 }
  0x23   : > { %p503_p3 = por %p502_p2, %p501_p1 }
  0x25   : > { %p504_p5 = pnand %p503_p3, %p499_p0 }
  0x27   : > { %507 = shalt.err (!%p504_p5)  }
  0x28   : > { %75 = dma.hbm_to_vmem [thread:$0]  %s71_s10, 16, %s73_s28, [#allocation3] }
  0x29   : > { %s1002_s6 = smov (!%p381_p11, %s79_s6), 511  ;;  %s765_s8 = smov [#allocation2 + $0x2]  }
  0x2a   : > { %s101_s25 = scalar_select %p100_p12, %s843_s5, 0 }
  0x2b   : > { %s82_s7 = scalar_lea.hbm %s990_s1, %s1002_s6  ;;  %s872_s9 = sshll.u32 %s765_s8, 4  ;;  %s117_s9 = int_to_ptr.vmem [resolvable:$true] %s872_s9 }
  0x2c   : > { %s92_s11 = sshll.u32 %s82_s7, 4  ;;  %s120_s12 = sadd.s32 3, %s828_s23  ;;  %s93_s11 = int_to_ptr.hbm [resolvable:$true] %s92_s11 }
  0x2d   : > { %s875_s28 = sld [smem:[#allocation5 + %s120_s12]]  ;;  %s520_s29 = sshra.s32 %s93_s11, 4  ;;  %s521_s29 = int_to_ptr.hbm [resolvable:$true] %s520_s29 }
  0x2e   : > { %s522_s10 = scalar_lea.hbm %s521_s29, 1  ;;  %p525_p8 = scmp.lt.s32.totalorder %s521_s29, %s990_s1 }
  0x2f   : > { %p523_p7 = scmp.ne.s32.totalorder %s521_s29, %s522_s10  ;;  %p526_p9 = scmp.lt.s32.totalorder %s858_s18, %s522_s10 }
  0x31   : > { %p527_p10 = por %p526_p9, %p525_p8 }
  0x33   : > { %p528_p11 = pnand %p527_p10, %p523_p7 }
  0x35   : > { %531 = shalt.err (!%p528_p11)  }
  0x36   : > { %97 = dma.hbm_to_vmem [thread:$0]  %s93_s11, 16, %s95_s4, [#allocation3 + $0x1] }
  0x37   : > { %s1004_s25 = smov (!%p386_p13, %s101_s25), 511  ;;  %s142_s30 = sadd.s32 4, %s828_s23 }
  0x38   : > { %s104_s27 = scalar_lea.hbm %s990_s1, %s1004_s25  ;;  %s766_s7 = smov [#allocation2 + $0x3]  }
  0x39   : > { %s114_s3 = sshll.u32 %s104_s27, 4  ;;  %s890_s8 = sshll.u32 %s766_s7, 4  ;;  %s115_s3 = int_to_ptr.hbm [resolvable:$true] %s114_s3  ;;  %s139_s8 = int_to_ptr.vmem [resolvable:$true] %s890_s8 }
  0x3a   : > { %p122_p12 = scmp.gt.s32.totalorder %s875_s28, 0  ;;  %s544_s12 = sshra.s32 %s115_s3, 4  ;;  %s545_s12 = int_to_ptr.hbm [resolvable:$true] %s544_s12 }
  0x3b   : > { %s546_s29 = scalar_lea.hbm %s545_s12, 1  ;;  %p549_p13 = scmp.lt.s32.totalorder %s545_s12, %s990_s1 }
  0x3c   : > { %p547_p0 = scmp.ne.s32.totalorder %s545_s12, %s546_s29  ;;  %p550_p1 = scmp.lt.s32.totalorder %s858_s18, %s546_s29 }
  0x3e   : > { %p551_p2 = por %p550_p1, %p549_p13 }
  0x40   : > { %p552_p3 = pnand %p551_p2, %p547_p0 }
  0x42   : > { %555 = shalt.err (!%p552_p3)  }
  0x43   : > { %119 = dma.hbm_to_vmem [thread:$0]  %s115_s3, 16, %s117_s9, [#allocation3 + $0x2] }
  0x44   : > { %s123_s5 = scalar_select %p122_p12, %s875_s28, 0 }
  0x45   : > { %p391_p5 = scmp.lt.s32.totalorder %s875_s28, 511  ;;  %s143_s25 = sld [smem:[#allocation5 + %s142_s30]] }
  0x46   : > { %s164_s11 = sadd.s32 5, %s828_s23  ;;  %s767_s0 = smov [#allocation2 + $0x4]  }
  0x47   : > { %s1006_s5 = smov (!%p391_p5, %s123_s5), 511  ;;  %s900_s17 = sshll.u32 %s767_s0, 4  ;;  %s161_s17 = int_to_ptr.vmem [resolvable:$true] %s900_s17 }
  0x48   : > { %s902_s6 = sld [smem:[#allocation5 + %s164_s11]]  ;;  %s126_s9 = scalar_lea.hbm %s990_s1, %s1006_s5 }
  0x49   : > { %s136_s3 = sshll.u32 %s126_s9, 4  ;;  %s137_s3 = int_to_ptr.hbm [resolvable:$true] %s136_s3 }
  0x4a   : > { %s568_s28 = sshra.s32 %s137_s3, 4  ;;  %s569_s28 = int_to_ptr.hbm [resolvable:$true] %s568_s28 }
  0x4b   : > { %p144_p7 = scmp.gt.s32.totalorder %s143_s25, 0  ;;  %s570_s30 = scalar_lea.hbm %s569_s28, 1 }
  0x4c   : > { %p571_p8 = scmp.ne.s32.totalorder %s569_s28, %s570_s30  ;;  %p573_p9 = scmp.lt.s32.totalorder %s569_s28, %s990_s1 }
  0x4d   : > { %p574_p10 = scmp.lt.s32.totalorder %s858_s18, %s570_s30 }
  0x4f   : > { %p575_p11 = por %p574_p10, %p573_p9 }
  0x51   : > { %p576_p12 = pnand %p575_p11, %p571_p8 }
  0x53   : > { %579 = shalt.err (!%p576_p12)  }
  0x54   : > { %141 = dma.hbm_to_vmem [thread:$0]  %s137_s3, 16, %s139_s8, [#allocation3 + $0x3] }
  0x55   : > { %s145_s29 = scalar_select %p144_p7, %s143_s25, 0 }
  0x56   : > { %p396_p0 = scmp.lt.s32.totalorder %s143_s25, 511  ;;  %p166_p13 = scmp.gt.s32.totalorder %s902_s6, 0 }
  0x57   : > { %p401_p1 = scmp.lt.s32.totalorder %s902_s6, 511  ;;  %s768_s0 = smov [#allocation2 + $0x5]  }
  0x58   : > { %s1008_s29 = smov (!%p396_p0, %s145_s29), 511  ;;  %s919_s26 = sshll.u32 %s768_s0, 4  ;;  %s183_s26 = int_to_ptr.vmem [resolvable:$true] %s919_s26 }
  0x59   : > { %s167_s10 = scalar_select %p166_p13, %s902_s6, 0 }
  0x5a   : > { %s148_s11 = scalar_lea.hbm %s990_s1, %s1008_s29  ;;  %s186_s8 = sadd.s32 6, %s828_s23 }
  0x5b   : > { %s158_s27 = sshll.u32 %s148_s11, 4  ;;  %s922_s9 = sld [smem:[#allocation5 + %s186_s8]]  ;;  %s159_s27 = int_to_ptr.hbm [resolvable:$true] %s158_s27 }
  0x5c   : > { %s592_s3 = sshra.s32 %s159_s27, 4  ;;  %s593_s3 = int_to_ptr.hbm [resolvable:$true] %s592_s3 }
  0x5d   : > { %s594_s25 = scalar_lea.hbm %s593_s3, 1  ;;  %p597_p3 = scmp.lt.s32.totalorder %s593_s3, %s990_s1 }
  0x5e   : > { %p595_p2 = scmp.ne.s32.totalorder %s593_s3, %s594_s25  ;;  %p598_p5 = scmp.lt.s32.totalorder %s858_s18, %s594_s25 }
  0x60   : > { %p599_p7 = por %p598_p5, %p597_p3 }
  0x62   : > { %p600_p8 = pnand %p599_p7, %p595_p2 }
  0x64   : > { %603 = shalt.err (!%p600_p8)  }
  0x65   : > { %163 = dma.hbm_to_vmem [thread:$0]  %s159_s27, 16, %s161_s17, [#allocation3 + $0x4] }
  0x66   : > { %s1010_s10 = smov (!%p401_p1, %s167_s10), 511  ;;  %s208_s5 = sadd.s32 7, %s828_s23 }
  0x67   : > { %s170_s29 = scalar_lea.hbm %s990_s1, %s1010_s10  ;;  %p188_p9 = scmp.gt.s32.totalorder %s922_s9, 0 }
  0x68   : > { %s180_s4 = sshll.u32 %s170_s29, 4  ;;  %s181_s4 = int_to_ptr.hbm [resolvable:$true] %s180_s4 }
  0x69   : > { %s616_s11 = sshra.s32 %s181_s4, 4  ;;  %s617_s11 = int_to_ptr.hbm [resolvable:$true] %s616_s11 }
  0x6a   : > { %s618_s0 = scalar_lea.hbm %s617_s11, 1  ;;  %p621_p11 = scmp.lt.s32.totalorder %s617_s11, %s990_s1 }
  0x6b   : > { %p619_p10 = scmp.ne.s32.totalorder %s617_s11, %s618_s0  ;;  %p622_p12 = scmp.lt.s32.totalorder %s858_s18, %s618_s0 }
  0x6d   : > { %p623_p0 = por %p622_p12, %p621_p11 }
  0x6f   : > { %p624_p13 = pnand %p623_p0, %p619_p10 }
  0x71   : > { %627 = shalt.err (!%p624_p13)  }
  0x72   : > { %185 = dma.hbm_to_vmem [thread:$0]  %s181_s4, 16, %s183_s26, [#allocation3 + $0x5] }
  0x73   : > { %s189_s17 = scalar_select %p188_p9, %s922_s9, 0 }
  0x74   : > { %p406_p1 = scmp.lt.s32.totalorder %s922_s9, 511  ;;  %s209_s6 = sld [smem:[#allocation5 + %s208_s5]] }
  0x75   : > { %s769_s10 = smov [#allocation2 + $0x6]  }
  0x76   : > { %s204_s27 = sshll.u32 %s769_s10, 4  ;;  %s1012_s17 = smov (!%p406_p1, %s189_s17), 511  ;;  %s205_s27 = int_to_ptr.vmem [resolvable:$true] %s204_s27 }
  0x77   : > { %s192_s30 = scalar_lea.hbm %s990_s1, %s1012_s17 }
  0x78   : > { %s202_s7 = sshll.u32 %s192_s30, 4  ;;  %s203_s7 = int_to_ptr.hbm [resolvable:$true] %s202_s7 }
  0x79   : > { %s640_s12 = sshra.s32 %s203_s7, 4  ;;  %s641_s12 = int_to_ptr.hbm [resolvable:$true] %s640_s12 }
  0x7a   : > { %p210_p2 = scmp.gt.s32.totalorder %s209_s6, 0  ;;  %s642_s26 = scalar_lea.hbm %s641_s12, 1 }
  0x7b   : > { %p643_p3 = scmp.ne.s32.totalorder %s641_s12, %s642_s26  ;;  %p645_p5 = scmp.lt.s32.totalorder %s641_s12, %s990_s1 }
  0x7c   : > { %p646_p7 = scmp.lt.s32.totalorder %s858_s18, %s642_s26 }
  0x7e   : > { %p647_p8 = por %p646_p7, %p645_p5 }
  0x80   : > { %p648_p9 = pnand %p647_p8, %p643_p3 }
  0x82   : > { %651 = shalt.err (!%p648_p9)  }
  0x83   : > { %207 = dma.hbm_to_vmem [thread:$0]  %s203_s7, 16, %s205_s27, [#allocation3 + $0x6] }
  0x84   : > { %s211_s9 = scalar_select %p210_p2, %s209_s6, 0 }
  0x85   : > { %p411_p10 = scmp.lt.s32.totalorder %s209_s6, 511  ;;  %s770_s5 = smov [#allocation2 + $0x7]  }
  0x86   : > { %s226_s11 = sshll.u32 %s770_s5, 4  ;;  %s227_s11 = int_to_ptr.vmem [resolvable:$true] %s226_s11 }
  0x87   : > { %s1014_s9 = smov (!%p411_p10, %s211_s9), 511 }
  0x88   : > { %s214_s3 = scalar_lea.hbm %s990_s1, %s1014_s9 }
  0x89   : > { %s224_s17 = sshll.u32 %s214_s3, 4  ;;  %s225_s17 = int_to_ptr.hbm [resolvable:$true] %s224_s17 }
  0x8a   : > { %s664_s10 = sshra.s32 %s225_s17, 4  ;;  %s665_s10 = int_to_ptr.hbm [resolvable:$true] %s664_s10 }
  0x8b   : > { %s666_s25 = scalar_lea.hbm %s665_s10, 1  ;;  %p669_p12 = scmp.lt.s32.totalorder %s665_s10, %s990_s1 }
  0x8c   : > { %p667_p11 = scmp.ne.s32.totalorder %s665_s10, %s666_s25  ;;  %p670_p0 = scmp.lt.s32.totalorder %s858_s18, %s666_s25 }
  0x8e   : > { %p671_p13 = por %p670_p0, %p669_p12 }
  0x90   : > { %p672_p1 = pnand %p671_p13, %p667_p11 }
  0x92   : > { %675 = shalt.err (!%p672_p1)  }
  0x93   : > { %229 = dma.hbm_to_vmem [thread:$0]  %s225_s17, 16, %s227_s11, [#allocation3 + $0x7] }
  0x94   : > { %s55_s6 = scalar_lea.vmem [#allocation6], %s832_s24 }
  0x95   : > { %730 = dma.done.wait [#allocation3], 16 }
  0x96   : > { %731 = vsyncadd [#allocation3], 4294967280 }
  0x97   : > { %732 = dma.done.wait [#allocation3 + $0x1], 16 }
  0x98   : > { %733 = vsyncadd [#allocation3 + $0x1], 4294967280 }
  0x99   : > { %734 = dma.done.wait [#allocation3 + $0x2], 16 }
  0x9a   : > { %735 = vsyncadd [#allocation3 + $0x2], 4294967280 }
  0x9b   : > { %736 = dma.done.wait [#allocation3 + $0x3], 16 }
  0x9c   : > { %737 = vsyncadd [#allocation3 + $0x3], 4294967280 }
  0x9d   : > { %738 = dma.done.wait [#allocation3 + $0x4], 16 }
  0x9e   : > { %739 = vsyncadd [#allocation3 + $0x4], 4294967280 }
  0x9f   : > { %740 = dma.done.wait [#allocation3 + $0x5], 16 }
  0xa0   : > { %741 = vsyncadd [#allocation3 + $0x5], 4294967280 }
  0xa1   : > { %742 = dma.done.wait [#allocation3 + $0x6], 16 }
  0xa2   : > { %743 = vsyncadd [#allocation3 + $0x6], 4294967280 }
  0xa3   : > { %744 = dma.done.wait [#allocation3 + $0x7], 16 }
  0xa4   : > { %745 = vsyncadd [#allocation3 + $0x7], 4294967280  ;;  %s260_s24 = scalar_lea.hbm %s991_s2, %s828_s23  ;;  %s262_s7 = sshll.u32 %s55_s6, 4  ;;  %v247_v0 = vld [vmem:[#allocation2] sm:$0xff]  ;;  %s263_s7 = int_to_ptr.vmem [resolvable:$true] %s262_s7 }
  0xa5   : > { %s264_s12 = sshll.u32 %s260_s24, 4  ;;  %248 = vst [vmem:[%s55_s6] sm:$0xff] %v247_v0  ;;  %s250_s26 = scalar_lea.sflag [#allocation7], %s53_s22  ;;  %s265_s12 = int_to_ptr.hbm [resolvable:$true] %s264_s12 }
  0xa6   : > { %s702_s29 = sshra.s32 %s265_s12, 4  ;;  %s708_s11 = scalar_lea.hbm %s991_s2, 32  ;;  %s703_s29 = int_to_ptr.hbm [resolvable:$true] %s702_s29 }
  0xa7   : > { %s704_s4 = scalar_lea.hbm %s703_s29, 8  ;;  %p709_p7 = scmp.lt.s32.totalorder %s703_s29, %s991_s2 }
  0xa8   : > { %p705_p2 = scmp.ne.s32.totalorder %s703_s29, %s704_s4  ;;  %p710_p8 = scmp.lt.s32.totalorder %s708_s11, %s704_s4 }
  0xaa   : > { %p706_p3 = pnand %p705_p2, %p817_p4  ;;  %p711_p9 = por %p710_p8, %p709_p7 }
  0xac   : > { %p707_p5 = pneg %p706_p3 }
  0xae   : > { %p712_p10 = pnand %p711_p9, %p707_p5 }
  0xb0   : > { %715 = shalt.err (!%p712_p10)
}
  0xb1   : > { %444 = dma.vmem_to_hbm [thread:$0]  (%p817_p4), %s263_s7, 128, %s265_s12, %s250_s26  }
  0xb2 PF: > { %p450_p11 = scmp.ge.s32.totalorder %s760_s15, 1  ;;  %s276_s22 = sand.u32 1, %s752_s13  }
  0xb3   : > { %s277_s8 = scalar_lea.sflag [#allocation7], %s276_s22 }
  0xb4   : > { %p447_p12 = pnand %p450_p11, %p821_p6 }
  0xb6   : > { %p448_p0 = pneg %p447_p12 }
  0xb8   : > { %747 = dma.done.wait (%p448_p0), %s277_s8, 128  }
  0xb9   : > { %749 = vsyncadd (%p448_p0), %s277_s8, 4294967168  ;;  %p20_p13 = scmp.ge.s32.totalorder %s806_s16, 5   ;;  %s994_s13 = smov %s756_s14 }
  0xba   : > { %s995_s14 = smov %s815_s19  ;;  %s996_s15 = smov %s806_s16 }
  0xbb   :  { %22 = sbr.rel (!%p20_p13) target bundleno = 9 (0x9), region = 105 }
  0xc0   :  { %283 = vsyncpa [#allocation7], 1 }
  0xc1   :  { %285 = vsyncpa [#allocation7 + $0x1], 1 }
  0xc2   :  { %286 = vsyncmov [#allocation3] }
  0xc5   :  { %s287_s15 = vpop.sfrf %286 }
  0xc6   :  { %p420_p4 = scmp.ne.s32.totalorder %s287_s15, 0 }
  0xc8   :  { %291 = shalt.err (%p420_p4)  }
  0xc9   :  { %293 = vsyncmov [#allocation3 + $0x1] }
  0xcc   :  { %s294_s20 = vpop.sfrf %293 }
  0xcd   :  { %p421_p6 = scmp.ne.s32.totalorder %s294_s20, 0 }
  0xcf   :  { %298 = shalt.err (%p421_p6)  }
  0xd0   :  { %300 = vsyncmov [#allocation3 + $0x2] }
  0xd3   :  { %s301_s21 = vpop.sfrf %300 }
  0xd4   :  { %p422_p1 = scmp.ne.s32.totalorder %s301_s21, 0 }
  0xd6   :  { %305 = shalt.err (%p422_p1)  }
  0xd7   :  { %307 = vsyncmov [#allocation3 + $0x3] }
  0xda   :  { %s308_s3 = vpop.sfrf %307 }
  0xdb   :  { %p423_p2 = scmp.ne.s32.totalorder %s308_s3, 0 }
  0xdd   :  { %312 = shalt.err (%p423_p2)  }
  0xde   :  { %314 = vsyncmov [#allocation3 + $0x4] }
  0xe1   :  { %s315_s16 = vpop.sfrf %314 }
  0xe2   :  { %p424_p3 = scmp.ne.s32.totalorder %s315_s16, 0 }
  0xe4   :  { %319 = shalt.err (%p424_p3)  }
  0xe5   :  { %321 = vsyncmov [#allocation3 + $0x5] }
  0xe8   :  { %s322_s1 = vpop.sfrf %321 }
  0xe9   :  { %p425_p5 = scmp.ne.s32.totalorder %s322_s1, 0 }
  0xeb   :  { %326 = shalt.err (%p425_p5)  }
  0xec   :  { %328 = vsyncmov [#allocation3 + $0x6] }
  0xef   :  { %s329_s2 = vpop.sfrf %328 }
  0xf0   :  { %p426_p7 = scmp.ne.s32.totalorder %s329_s2, 0 }
  0xf2   :  { %333 = shalt.err (%p426_p7)  }
  0xf3   :  { %335 = vsyncmov [#allocation3 + $0x7] }
  0xf6   :  { %s336_s13 = vpop.sfrf %335 }
  0xf7   :  { %p427_p8 = scmp.ne.s32.totalorder %s336_s13, 0 }
  0xf9   :  { %340 = shalt.err (%p427_p8)  }

</bundles_post_ra>
